<compile_context>
chip_gen: v7x
topology: tpu7x:2x2x1
jax: 0.10.0
libtpu: 0.0.40
codegen_flags: <defaults>
</compile_context>

<pallas_src>
import functools

import jax
import jax.numpy as jnp
from jax.experimental import pallas as pl
from jax.experimental.pallas import tpu as pltpu


def _round_up(x: int, m: int) -> int:
    return ((x + m - 1) // m) * m


def _gan_bce_block_kernel(x_ref, out_ref, *, is_real, total, block_rows, lane):
    """One row-block of the stable BCE-with-logits partial sum.

    x_ref:   VMEM [block_rows, lane]   logits tile (native dtype; cast to f32 here)
    out_ref: VMEM [1, 8, lane]         per-(sublane, lane) partial sums for this block
    """
    x = x_ref[...].astype(jnp.float32)

    # Numerically stable BCEWithLogits with the constant label folded in at trace time.
    lin = jnp.maximum(-x, 0.0) if is_real else jnp.maximum(x, 0.0)
    per = lin + jnp.log1p(jnp.exp(-jnp.abs(x)))

    # Mask out zero-padded tail elements (flat index >= total) so they contribute 0.
    i = pl.program_id(0)
    row = jax.lax.broadcasted_iota(jnp.int32, (block_rows, lane), 0) + i * block_rows
    col = jax.lax.broadcasted_iota(jnp.int32, (block_rows, lane), 1)
    valid = (row * lane + col) < total
    per = jnp.where(valid, per, 0.0)

    # Reduce the block to an (8, lane) partial-sum tile (groups of 8 rows -> sublane tile).
    part = jnp.sum(per.reshape(block_rows // 8, 8, lane), axis=0)
    out_ref[0] = part


def gan_loss(d_last_layer, is_d_input_real: bool, *, lane: int = 512, block_rows: int = 512):
    """JAX/Pallas equivalent of GANLoss.forward.

    d_last_layer: [N, C, H, W] logits from the discriminator (the PyTorch module
                  hard-codes the label to shape [1, 3, H, W], so N=1, C=3 in practice).
    is_d_input_real: python bool (specialized at trace time).
    returns: scalar f32 loss.
    """
    total = int(d_last_layer.size)
    x_flat = d_last_layer.reshape(-1)  # keep native dtype: bf16 inputs stream as bf16

    # Lane-dense tiling: rows of `lane` elements, blocks of `block_rows` rows (multiple of 8).
    rows_needed = -(-total // lane)
    block_rows = max(8, min(_round_up(block_rows, 8), _round_up(rows_needed, 8)))
    padded_rows = _round_up(rows_needed, block_rows)
    num_blocks = padded_rows // block_rows

    pad = padded_rows * lane - total
    if pad:
        x_flat = jnp.pad(x_flat, (0, pad))
    x2d = x_flat.reshape(padded_rows, lane)

    kernel = functools.partial(
        _gan_bce_block_kernel,
        is_real=bool(is_d_input_real),
        total=total,
        block_rows=block_rows,
        lane=lane,
    )

    partials = pl.pallas_call(
        kernel,
        out_shape=jax.ShapeDtypeStruct((num_blocks, 8, lane), jnp.float32),
        grid=(num_blocks,),
        in_specs=[pl.BlockSpec((block_rows, lane), lambda i: (i, 0))],
        out_specs=pl.BlockSpec((1, 8, lane), lambda i: (i, 0, 0)),
        compiler_params=pltpu.CompilerParams(
            dimension_semantics=("parallel",),      # independent blocks -> megacore sharding
            vmem_limit_bytes=32 * 1024 * 1024,       # explicit; tiles use ~2-3 MiB double-buffered
        ),
    )(x2d)

    # Finish the reduction (order-independent mean) in plain XLA.
    return jnp.sum(partials) * jnp.float32(1.0 / total)


def _reference_loss(d_last_layer, is_real):
    x = d_last_layer.astype(jnp.float32)
    y = 1.0 if is_real else 0.0
    per = jnp.maximum(x, 0.0) - x * y + jnp.log1p(jnp.exp(-jnp.abs(x)))
    return jnp.mean(per)


if __name__ == "__main__":
    key = jax.random.PRNGKey(0)
    k0, k1 = jax.random.split(key)

    # Matches the module's hard-coded label shape [1, 3, H, W].
    x_a = jax.random.normal(k0, (1, 3, 16, 16), dtype=jnp.float32)
    # Ragged shape to exercise multi-block grid + tail masking (small tiles forced).
    x_b = jax.random.normal(k1, (1, 3, 17, 23), dtype=jnp.float32)
    # bf16 logits: streamed as bf16, cast to f32 per-tile inside the kernel.
    x_a_bf16 = x_a.astype(jnp.bfloat16)

    checks = [
        (gan_loss(x_a, True), _reference_loss(x_a, True)),
        (gan_loss(x_a, False), _reference_loss(x_a, False)),
        (gan_loss(x_b, True, lane=128, block_rows=8), _reference_loss(x_b, True)),
        (gan_loss(x_b, False, lane=128, block_rows=8), _reference_loss(x_b, False)),
        (gan_loss(x_a_bf16, True), _reference_loss(x_a_bf16, True)),
        (gan_loss(x_a_bf16, False), _reference_loss(x_a_bf16, False)),
    ]

    for got, ref in checks:
        got = jax.block_until_ready(got)
        assert jnp.allclose(got, ref, atol=1e-5, rtol=1e-5), (got, ref)

    print("KERNEL_OK")
</pallas_src>

<mosaic_0001>
module attributes {stable_mosaic.version = 11 : i64} {
  func.func @_gan_bce_block_kernel(%arg0: i32, %arg1: memref<8x512xf32, #tpu.memory_space<vmem>>, %arg2: memref<1x8x512xf32, #tpu.memory_space<vmem>>) attributes {dimension_semantics = [#tpu.dimension_semantics<parallel>], iteration_bounds = array<i64: 1>, scalar_prefetch = 0 : i64, scratch_operands = 0 : i64, tpu.core_type = #tpu.core_type<tc>, window_params = [{transform_indices = @transform_0, window_bounds = array<i64: 8, 512>}, {transform_indices = @transform_1, window_bounds = array<i64: 1, 8, 512>}]} {
    %c0 = arith.constant 0 : index
    %c0_0 = arith.constant 0 : index
    %0 = vector.load %arg1[%c0, %c0_0] : memref<8x512xf32, #tpu.memory_space<vmem>>, vector<8x512xf32>
    %cst = arith.constant 0.000000e+00 : f32
    %1 = vector.broadcast %cst : f32 to vector<8x512xf32>
    %2 = arith.subf %1, %0 : vector<8x512xf32>
    %cst_1 = arith.constant 0.000000e+00 : f32
    %3 = vector.broadcast %cst_1 : f32 to vector<8x512xf32>
    %4 = arith.maximumf %2, %3 : vector<8x512xf32>
    %5 = math.absf %0 : vector<8x512xf32>
    %cst_2 = arith.constant 0.000000e+00 : f32
    %6 = vector.broadcast %cst_2 : f32 to vector<8x512xf32>
    %7 = arith.subf %6, %5 : vector<8x512xf32>
    %8 = math.exp %7 : vector<8x512xf32>
    %9 = math.log1p %8 : vector<8x512xf32>
    %10 = arith.addf %4, %9 : vector<8x512xf32>
    %11 = tpu.iota {dimensions = array<i32: 0>} : vector<8x512xi32>
    %c8_i32 = arith.constant 8 : i32
    %12 = arith.muli %arg0, %c8_i32 : i32
    %13 = vector.broadcast %12 : i32 to vector<8x512xi32>
    %14 = arith.addi %11, %13 : vector<8x512xi32>
    %15 = tpu.iota {dimensions = array<i32: 1>} : vector<8x512xi32>
    %c512_i32 = arith.constant 512 : i32
    %16 = vector.broadcast %c512_i32 : i32 to vector<8x512xi32>
    %17 = arith.muli %14, %16 : vector<8x512xi32>
    %18 = arith.addi %17, %15 : vector<8x512xi32>
    %c768_i32 = arith.constant 768 : i32
    %19 = vector.broadcast %c768_i32 : i32 to vector<8x512xi32>
    %20 = arith.cmpi slt, %18, %19 : vector<8x512xi32>
    %cst_3 = arith.constant 0.000000e+00 : f32
    %21 = vector.broadcast %cst_3 : f32 to vector<8x512xf32>
    %22 = arith.select %20, %10, %21 : vector<8x512xi1>, vector<8x512xf32>
    %23 = vector.shape_cast %22 : vector<8x512xf32> to vector<1x8x512xf32>
    %cst_4 = arith.constant dense<0.000000e+00> : vector<8x512xf32>
    %24 = vector.multi_reduction <add>, %23, %cst_4 [0] : vector<1x8x512xf32> to vector<8x512xf32>
    %c0_5 = arith.constant 0 : index
    %c0_6 = arith.constant 0 : index
    %c0_7 = arith.constant 0 : index
    %25 = vector.load %arg2[%c0_5, %c0_6, %c0_7] : memref<1x8x512xf32, #tpu.memory_space<vmem>>, vector<1x8x512xf32>
    %26 = vector.shape_cast %25 : vector<1x8x512xf32> to vector<8x512xf32>
    %27 = vector.shape_cast %24 : vector<8x512xf32> to vector<1x8x512xf32>
    tpu.vector_store %arg2[%c0_5, %c0_6, %c0_7], %27 {strides = array<i32>} : memref<1x8x512xf32, #tpu.memory_space<vmem>>, vector<1x8x512xf32>,
    return
  }
  func.func @transform_0(%arg0: i32) -> (i32, i32) {
    %c0_i32 = arith.constant 0 : i32
    %c0_i32_0 = arith.constant 0 : i32
    return %arg0, %c0_i32 : i32, i32
  }
  func.func @transform_1(%arg0: i32) -> (i32, i32, i32) {
    %c0_i32 = arith.constant 0 : i32
    %c0_i32_0 = arith.constant 0 : i32
    %c0_i32_1 = arith.constant 0 : i32
    return %arg0, %c0_i32, %c0_i32_0 : i32, i32, i32
  }
}

</mosaic_0001>

<bundles_post_ra>
// kernel: tpu_custom_call.1
= control target key start
LH: loop header
LB: loop body
LE: loop exit
PB: predicated region body
PF: predicated region fallthrough
CT: control target
= control target key end

     0   :  { %6 = vsyncpa [#allocation3], 0  ;;  %s263_s0 = inlined_call_operand.hbm [shape: f32[8,512], index: 0, kind: input, shape index: {}]   ;;  %s264_s1 = inlined_call_operand.hbm [shape: f32[1,8,512], index: 1, kind: output, shape index: {}]  }
   0x1   :  { %7 = vsyncpa [#allocation4], 0  ;;  %s201_s6 = smov [#allocation2]   ;;  %s153_s10 = scalar_lea.hbm %s263_s0, 512 }
   0x2   :  { %s14_s7 = sshll.u32 %s201_s6, 4  ;;  %p154_p0 = scmp.ne.s32.totalorder %s263_s0, %s153_s10  ;;  %s15_s7 = int_to_ptr.vmem [resolvable:$true] %s14_s7 }
   0x3   :  { %p157_p1 = scmp.lt.u32.totalorder %s153_s10, %s263_s0 }
   0x5   :  { %p159_p2 = pnand %p157_p1, %p154_p0 }
   0x7   :  { %162 = shalt.err (!%p159_p2)
}
   0x8   :  { %s163_s15 = scalar_lea.vmem %s15_s7, 512  ;;  %p168_p4 = scmp.lt.s32.totalorder %s15_s7, %s15_s7 }
   0x9   :  { %p164_p3 = scmp.ne.s32.totalorder %s15_s7, %s163_s15  ;;  %p169_p5 = scmp.lt.s32.totalorder %s163_s15, %s163_s15 }
   0xb   :  { %p170_p6 = por %p169_p5, %p168_p4 }
   0xd   :  { %p171_p7 = pnand %p170_p6, %p164_p3 }
   0xf   :  { %174 = shalt.err (!%p171_p7)
}
  0x10   :  { %17 = dma.hbm_to_vmem [thread:$0]  %s263_s0, 512, %s15_s7, [#allocation3]  }
  0x11   :  { %197 = dma.done.wait [#allocation3], 512  }
  0x12   :  { %198 = vsyncadd [#allocation3], 4294966784  ;;  %v21_v0 = vld [vmem:[#allocation2] sm:$0xff]  ;;  %v225_v1 = vld [vmem:[#allocation2 + $0x8] sm:$0xff]  ;;  %v89_v16 = vlaneseq  ;;  %s202_s0 = smov [#allocation5]  }
  0x13   :  { %v227_v2 = vld [vmem:[#allocation2 + $0x10] sm:$0xff]  ;;  %v33_v3 = vand.u32 2147483647, %v21_v0  ;;  %v34_v4 = vand.u32 2147483647, %v225_v1  ;;  %v231_v6 = vld [vmem:[#allocation2 + $0x18] sm:$0xff] }
  0x14   :  { %v35_v5 = vand.u32 2147483647, %v227_v2  ;;  %v36_v11 = vand.u32 2147483647, %v231_v6  ;;  %v90_v21 = vshrl.u32 %v89_v16, 7  ;;  %v95_v23 = vand.u32 127, %v89_v16 }
  0x15   :  { %v37_v7 = vsub.f32 0.0, %v33_v3  ;;  %v38_v8 = vsub.f32 0.0, %v34_v4  ;;  %v25_v33 = vsub.f32 0.0, %v21_v0  ;;  %v26_v40 = vsub.f32 0.0, %v225_v1  ;;  %s126_s18 = sshll.u32 %s202_s0, 4  ;;  %s127_s18 = int_to_ptr.vmem [resolvable:$true] %s126_s18 }
  0x16   :  { %v39_v9 = vsub.f32 0.0, %v35_v5  ;;  %v40_v14 = vsub.f32 0.0, %v36_v11  ;;  %v99_v29 = vmul.u32 512, %v90_v21  ;;  %v96_v31 = vadd.s32 128, %v95_v23  ;;  %s175_s19 = scalar_lea.vmem %s127_s18, 512  ;;  %p180_p9 = scmp.lt.s32.totalorder %s127_s18, %s127_s18 }
  0x17   :  { %v41_v10 = vmul.f32 1.442695, %v37_v7  ;;  %v43_v12 = vmul.f32 1.442695, %v38_v8  ;;  %v97_v32 = vadd.s32 256, %v95_v23  ;;  %v98_v36 = vadd.s32 384, %v95_v23  ;;  %p176_p8 = scmp.ne.s32.totalorder %s127_s18, %s175_s19  ;;  %p181_p10 = scmp.lt.s32.totalorder %s175_s19, %s175_s19 }
  0x18   :  { %v45_v13 = vmul.f32 1.442695, %v39_v9  ;;  %v47_v15 = vmul.f32 1.442695, %v40_v14  ;;  %v100_v39 = vadd.s32 %v99_v29, %v95_v23  ;;  %v101_v43 = vadd.s32 %v99_v29, %v96_v31 }
  0x19   :  { %137 = vpow2.f32 %v41_v10  ;;  %v27_v44 = vsub.f32 0.0, %v227_v2  ;;  %v102_v46 = vadd.s32 %v99_v29, %v97_v32  ;;  %v29_v47 = vmax.f32 %v25_v33, 0.0  ;;  %p182_p11 = por %p181_p10, %p180_p9 }
  0x1a   :  { %139 = vpow2.f32 %v43_v12  ;;  %v103_v50 = vadd.s32 %v99_v29, %v98_v36  ;;  %v28_v54 = vsub.f32 0.0, %v231_v6  ;;  %v30_v58 = vmax.f32 %v26_v40, 0.0 }
  0x1b   :  { %141 = vpow2.f32 %v45_v13  ;;  %vm104_vm2 = vcmp.lt.s32.totalorder %v100_v39, 768  ;;  %v31_v63 = vmax.f32 %v27_v44, 0.0  ;;  %vm105_vm4 = vcmp.lt.s32.totalorder %v101_v43, 768  ;;  %p183_p12 = pnand %p182_p11, %p176_p8 }
  0x1c   :  { %143 = vpow2.f32 %v47_v15  ;;  %v32_v6 = vmax.f32 %v28_v54, 0.0  ;;  %vm106_vm6 = vcmp.lt.s32.totalorder %v102_v46, 768  ;;  %vm107_vm7 = vcmp.lt.s32.totalorder %v103_v50, 768 }
  0x23   :  { %v138_v17 = vpop.eup %137 }
  0x24   :  { %v140_v18 = vpop.eup %139  ;;  %v49_v19 = vadd.f32 1.0, %v138_v17  ;;  %v52_v26 = vmul.f32 -0.5, %v138_v17  ;;  %v55_v37 = vand.u32 2147483647, %v138_v17 }
  0x25   :  { %v142_v20 = vpop.eup %141  ;;  %v58_v22 = vadd.f32 1.0, %v140_v18  ;;  %v61_v27 = vmul.f32 -0.5, %v140_v18  ;;  %v64_v41 = vand.u32 2147483647, %v140_v18 }
  0x26   :  { %145 = vlog2.f32 %v49_v19  ;;  %v67_v24 = vadd.f32 1.0, %v142_v20  ;;  %v144_v25 = vpop.eup %143  ;;  %v70_v30 = vmul.f32 -0.5, %v142_v20  ;;  %v53_v34 = vadd.f32 1.0, %v52_v26 }
  0x27   :  { %147 = vlog2.f32 %v58_v22  ;;  %v76_v28 = vadd.f32 1.0, %v144_v25  ;;  %v79_v35 = vmul.f32 -0.5, %v144_v25  ;;  %v62_v38 = vadd.f32 1.0, %v61_v27 }
  0x28   :  { %149 = vlog2.f32 %v67_v24  ;;  %v71_v42 = vadd.f32 1.0, %v70_v30  ;;  %v73_v45 = vand.u32 2147483647, %v142_v20  ;;  %v54_v48 = vmul.f32 %v138_v17, %v53_v34 }
  0x29   :  { %151 = vlog2.f32 %v76_v28  ;;  %v80_v49 = vadd.f32 1.0, %v79_v35  ;;  %vm236_vm0 = vcmp.lt.f32.partialorder %v55_v37, 0.0004427343  ;;  %v63_v53 = vmul.f32 %v140_v18, %v62_v38 }
  0x2a   :  { %v82_v55 = vand.u32 2147483647, %v144_v25  ;;  %vm241_vm1 = vcmp.lt.f32.partialorder %v64_v41, 0.0004427343  ;;  %v72_v60 = vmul.f32 %v142_v20, %v71_v42  ;;  %vm74_vm3 = vcmp.lt.f32.partialorder %v73_v45, 0.0004427343 }
  0x2b   :  { %v81_v2 = vmul.f32 %v144_v25, %v80_v49 }
  0x2c   :  { %vm83_vm5 = vcmp.lt.f32.partialorder %v82_v55, 0.0004427343 }
  0x30   :  { %v146_v51 = vpop.eup %145 }
  0x31   :  { %v148_v56 = vpop.eup %147  ;;  %v51_v57 = vmul.f32 0.6931472, %v146_v51 }
  0x32   :  { %v150_v61 = vpop.eup %149  ;;  %v60_v62 = vmul.f32 0.6931472, %v148_v56 }
  0x33   :  { %v57_v0 = vsel %vm236_vm0, %v54_v48, %v51_v57  ;;  %v69_v1 = vmul.f32 0.6931472, %v150_v61  ;;  %v152_v3 = vpop.eup %151 }
  0x34   :  { %v85_v4 = vadd.f32 %v57_v0, %v29_v47  ;;  %v66_v5 = vsel %vm241_vm1, %v63_v53, %v60_v62  ;;  %v78_v9 = vmul.f32 0.6931472, %v152_v3 }
  0x35   :  { %v86_v7 = vadd.f32 %v66_v5, %v30_v58  ;;  %v75_v8 = vsel %vm74_vm3, %v72_v60, %v69_v1 }
  0x36   :  { %v108_v10 = vsel %vm104_vm2, %v85_v4, 0.0  ;;  %v87_v11 = vadd.f32 %v75_v8, %v31_v63  ;;  %v84_v13 = vsel %vm83_vm5, %v81_v2, %v78_v9 }
  0x37   :  { %116 = vst [vmem:[#allocation5] sm:$0xff] %v108_v10  ;;  %v109_v12 = vsel %vm105_vm4, %v86_v7, 0.0  ;;  %v88_v15 = vadd.f32 %v84_v13, %v32_v6 }
  0x38   :  { %117 = vst [vmem:[#allocation5 + $0x8] sm:$0xff] %v109_v12  ;;  %v110_v14 = vsel %vm106_vm6, %v87_v11, 0.0 }
  0x39   :  { %118 = vst [vmem:[#allocation5 + $0x10] sm:$0xff] %v110_v14  ;;  %v111_v16 = vsel %vm107_vm7, %v88_v15, 0.0 }
  0x3a   :  { %119 = vst [vmem:[#allocation5 + $0x18] sm:$0xff] %v111_v16 }
  0x3b   :  { %186 = shalt.err (!%p183_p12)
}
  0x3c   :  { %s187_s22 = scalar_lea.hbm %s264_s1, 512 }
  0x3d   :  { %p188_p13 = scmp.ne.s32.totalorder %s264_s1, %s187_s22  ;;  %p191_p0 = scmp.lt.u32.totalorder %s187_s22, %s264_s1 }
  0x3f   :  { %p193_p1 = pnand %p191_p0, %p188_p13 }
  0x41   :  { %196 = shalt.err (!%p193_p1)
}
  0x42   :  { %129 = dma.vmem_to_hbm [thread:$0]  %s127_s18, 512, %s264_s1, [#allocation4]  }
  0x43   :  { %199 = dma.done.wait [#allocation4], 512  }
  0x44   :  { %200 = vsyncadd [#allocation4], 4294966784 }
  0x45   :  { %133 = vsyncpa [#allocation3], 1 }
  0x46   :  { %134 = vsyncpa [#allocation4], 1 }

</bundles_post_ra>
